<compile_context>
chip_gen: v6e
topology: v6e:2x2x1
jax: 0.10.0
libtpu: 0.0.40
codegen_flags: <defaults>
</compile_context>

<pallas_src>
import functools

import jax
import jax.numpy as jnp
from jax.experimental import pallas as pl
from jax.experimental.pallas import tpu as pltpu


def _round_up(v, m):
    return ((int(v) + m - 1) // m) * m


def _mlp_kernel(n_hidden, out_dim, add_sigmoid,
                x_ref, w0_ref, wh_ref, aux_ref, out_ref):
    """One batch tile, batch in the lane axis; params are VMEM-resident.

    x_ref  : (tile_b, in_size)          streamed input tile (any float dtype)
    w0_ref : (H, in_size)        bf16   transposed block-diagonal SplitLinear weight
    wh_ref : (max(n_hidden,1), H, H) bf16  transposed hidden weights (leading dim indexed)
    aux_ref: (H, 2 + n_hidden + out_dim) f32
             col 0: split bias | cols 1..n_hidden: hidden biases |
             next out_dim cols: head weight (H, out_dim) | last col: head bias (rows 0..out_dim)
    out_ref: (out_dim, tile_b)   f32    lane-dense output slab
    """
    xb = x_ref[...].astype(jnp.bfloat16)

    # ---- SplitLinear fused as one block-diagonal matmul, batch in lanes:
    # (H, in) x (tile_b, in) contracting the feature dim -> (H, tile_b).
    y = jax.lax.dot_general(w0_ref[...], xb, (((1,), (1,)), ((), ())),
                            preferred_element_type=jnp.float32)
    y = y + aux_ref[:, 0:1]

    # ---- Hidden layers: ReLU (fused with bf16 downcast) -> Linear.
    # TODO(synk): training-mode dropout would need pltpu.prng_random_bits masking.
    for li in range(n_hidden):
        yb = jnp.maximum(y.astype(jnp.bfloat16), 0)           # max-with-0 == relu-then-cast
        y = jnp.dot(wh_ref[li], yb, preferred_element_type=jnp.float32)
        y = y + aux_ref[:, 1 + li:2 + li]

    # ---- Output head: ReLU -> Linear -> (Sigmoid).  Head weights stay f32.
    yb = jnp.maximum(y.astype(jnp.bfloat16), 0)
    hw_cols = aux_ref[:, 1 + n_hidden:1 + n_hidden + out_dim]                  # (H, out_dim)
    hb_col = aux_ref[0:out_dim, 1 + n_hidden + out_dim:2 + n_hidden + out_dim] # (out_dim, 1)
    if out_dim == 1:
        # VPU multiply + cross-sublane (XLU) reduce -> lane-dense (1, tile_b) row.
        o = jnp.sum(yb * hw_cols, axis=0, keepdims=True) + hb_col
    else:
        o = jax.lax.dot_general(hw_cols.astype(jnp.bfloat16), yb,
                                (((0,), (0,)), ((), ())),
                                preferred_element_type=jnp.float32) + hb_col
    if add_sigmoid:
        o = jax.nn.sigmoid(o)

    out_ref[...] = o.astype(out_ref.dtype)                     # unmasked lane-dense store


def _pack_params(params, input_structure, hidden_structure, output_structure):
    """Host-side packing (transposed, alignment-safe layout).

    Returns:
      w0t : (H, in_size)               bf16  transposed block-diagonal SplitLinear weight
      wh  : (max(n_hidden,1), H, H)    bf16  transposed hidden weights
      aux : (H, 2 + n_hidden + out_dim) f32  biases + head weight/bias columns
    """
    in_dims = [i for (i, _o) in input_structure]
    out_dims = [o for (_i, o) in input_structure]
    in_size = int(sum(in_dims))
    H = int(sum(out_dims))
    n_hidden = len(hidden_structure)
    out_dim = int(output_structure[1])

    for (hi, ho, _p) in hidden_structure:
        assert hi == H and ho == H, "packing assumes H->H hidden layers"
    assert output_structure[0] == H and out_dim <= H

    idx = 0
    # Block-diagonal SplitLinear weight + concatenated split bias.
    w_bd = jnp.zeros((in_size, H), jnp.float32)
    b_split = jnp.zeros((H,), jnp.float32)
    r = c = 0
    for (i_d, o_d) in input_structure:
        w, b = params[idx], params[idx + 1]
        idx += 2
        w_bd = w_bd.at[r:r + i_d, c:c + o_d].set(w)
        b_split = b_split.at[c:c + o_d].set(b.reshape(-1))
        r += i_d
        c += o_d
    w0t = jnp.transpose(w_bd).astype(jnp.bfloat16)             # (H, in_size)

    hidden_wt, hidden_bs = [], []
    for _ in range(n_hidden):
        w, b = params[idx], params[idx + 1]
        idx += 2
        hidden_wt.append(jnp.transpose(w))                      # (H, H)
        hidden_bs.append(b.reshape(-1))
    if n_hidden > 0:
        wh = jnp.stack(hidden_wt, axis=0).astype(jnp.bfloat16)  # (n_hidden, H, H)
    else:
        wh = jnp.zeros((1, H, H), jnp.bfloat16)                  # dummy, unused

    w_head, b_head = params[idx], params[idx + 1]                # (H, out_dim), (1, out_dim)

    ncols = 2 + n_hidden + out_dim
    aux = jnp.zeros((H, ncols), jnp.float32)
    aux = aux.at[:, 0].set(b_split)
    for li, b in enumerate(hidden_bs):
        aux = aux.at[:, 1 + li].set(b)
    aux = aux.at[:, 1 + n_hidden:1 + n_hidden + out_dim].set(w_head.astype(jnp.float32))
    aux = aux.at[0:out_dim, 1 + n_hidden + out_dim].set(b_head.reshape(-1).astype(jnp.float32))

    return w0t, wh, aux, in_size, H, n_hidden, out_dim


def _vmem_limit_bytes():
    """Generation-aware scoped-VMEM limit: ~half of physical, clamped to [32, 96] MiB."""
    mib = 1024 * 1024
    try:
        phys = int(getattr(pltpu.get_tpu_info(), "vmem_capacity_bytes", 64 * mib))
    except Exception:  # pragma: no cover - conservative fallback off-TPU / old jax
        phys = 64 * mib
    return int(min(96 * mib, max(32 * mib, phys // 2)))


def custom_mlp_nn_forward(x, params, *, input_structure, hidden_structure,
                          output_structure, add_sigmoid=True, block_rows=2048):
    """params: flat list [w0, b0, w1, b1, ...] with w as (in, out), b as (1, out).

    x is streamed in its own dtype (pass bf16 from the producer when possible —
    it is the dominant HBM traffic; the kernel casts to bf16 internally anyway).
    """
    batch = int(x.shape[0])
    w0t, wh, aux, in_size, H, n_hidden, out_dim = _pack_params(
        params, input_structure, hidden_structure, output_structure)
    assert x.shape[1] == in_size

    # ---- Batch tile selection (batch fills the lane axis -> multiples of 128).
    # Big tiles amortize the ~0.35us/step overhead and keep DMAs on the HBM
    # roofline; VMEM is nowhere near limiting (x tile is <= a few MB).  Keep at
    # least 2 tiles whenever batch >= 256 so v7x's 2 TensorCores both get work.
    tile_b = min(_round_up(int(block_rows), 128), _round_up(batch, 128))
    if batch <= tile_b and batch >= 256:
        tile_b = _round_up(pl.cdiv(batch, 2), 128)
    num_tiles = pl.cdiv(batch, tile_b)
    padded_batch = num_tiles * tile_b

    kernel = functools.partial(_mlp_kernel, n_hidden, out_dim, add_sigmoid)

    flops = 2 * batch * (in_size * H + n_hidden * H * H + H * out_dim)
    bytes_accessed = (batch * in_size * x.dtype.itemsize + batch * out_dim * 4
                      + 2 * int(w0t.size) + 2 * int(wh.size) + 4 * int(aux.size))
    cost = pl.CostEstimate(
        flops=flops,
        transcendentals=batch * out_dim if add_sigmoid else 0,
        bytes_accessed=bytes_accessed)

    out_t = pl.pallas_call(
        kernel,
        out_shape=jax.ShapeDtypeStruct((out_dim, padded_batch), jnp.float32),
        grid=(num_tiles,),
        in_specs=[
            pl.BlockSpec((tile_b, in_size), lambda i: (i, 0)),   # streamed batch tile
            pl.BlockSpec(w0t.shape, lambda i: (0, 0)),           # resident SplitLinear weight
            pl.BlockSpec(wh.shape, lambda i: (0, 0, 0)),         # resident hidden weights
            pl.BlockSpec(aux.shape, lambda i: (0, 0)),           # resident biases / head
        ],
        out_specs=pl.BlockSpec((out_dim, tile_b), lambda i: (0, i)),   # lane-dense slab
        compiler_params=pltpu.CompilerParams(
            dimension_semantics=("parallel",),
            vmem_limit_bytes=_vmem_limit_bytes()),
        cost_estimate=cost,
    )(x, w0t, wh, aux)

    # Layout plumbing only: (out_dim, padded_batch) -> (batch, out_dim).
    # Padded dead batch lanes (ragged last tile) are dropped here.
    return jnp.transpose(out_t)[:batch]


def _reference_forward(x, params, *, input_structure, hidden_structure,
                       output_structure, add_sigmoid=True):
    """Pure-JAX f32 reference matching the PyTorch forward, for verification."""
    idx = 0
    pieces = []
    in_off = 0
    for (in_dim, _out_dim) in input_structure:
        w, b = params[idx], params[idx + 1]
        idx += 2
        pieces.append(x[:, in_off:in_off + in_dim] @ w + b)
        in_off += in_dim
    y = jnp.concatenate(pieces, axis=-1)
    for _ in hidden_structure:
        w, b = params[idx], params[idx + 1]
        idx += 2
        y = jnp.maximum(y, 0.0) @ w + b
    w, b = params[idx], params[idx + 1]
    y = jnp.maximum(y, 0.0) @ w + b
    if add_sigmoid:
        y = jax.nn.sigmoid(y)
    return y


def _init_params(key, input_structure, hidden_structure, output_structure):
    """Deterministic synthetic parameters; shapes follow the module __init__."""
    params = []
    layer_shapes = (
        [(i, o) for (i, o) in input_structure]
        + [(i, o) for (i, o, _p) in hidden_structure]
        + [(output_structure[0], output_structure[1])]
    )
    for (in_dim, out_dim) in layer_shapes:
        key, kw, kb = jax.random.split(key, 3)
        scale = 1.0 / jnp.sqrt(jnp.float32(in_dim))
        w = jax.random.uniform(kw, (in_dim, out_dim), jnp.float32, -scale, scale)
        b = jax.random.uniform(kb, (1, out_dim), jnp.float32, -scale, scale)
        params += [w, b]
    return params


if __name__ == "__main__":
    # SplitLinear over two 32-wide input slices -> 16-wide outputs each (in=64, out=32),
    # 2 hidden layers 32->32, output head 32->1 with sigmoid.
    input_structure = ((32, 16), (32, 16))
    hidden_structure = ((32, 32, 0.0), (32, 32, 0.0))
    output_structure = (32, 1, 0.0)
    add_sigmoid = True

    key = jax.random.PRNGKey(0)
    key, kx = jax.random.split(key)
    in_size = sum(i for (i, _o) in input_structure)
    batch = 512
    x = jax.random.normal(kx, (batch, in_size), jnp.float32)
    params = _init_params(key, input_structure, hidden_structure, output_structure)

    kwargs = dict(input_structure=input_structure, hidden_structure=hidden_structure,
                  output_structure=output_structure, add_sigmoid=add_sigmoid)

    # Even batch (2 tiles of 256 -> both v7x cores busy, no ragged edge).
    out = jax.block_until_ready(custom_mlp_nn_forward(x, params, **kwargs))
    ref = _reference_forward(x, params, **kwargs)
    assert out.shape == (batch, output_structure[1])
    # bf16 matmul operands (f32 accumulate) vs the all-f32 reference: loose tolerance.
    assert jnp.allclose(out, ref, atol=2e-2, rtol=2e-2), "mismatch vs pure-JAX reference"

    # Ragged batch (not a multiple of the 128-lane tile): padded dead lanes are dropped.
    x2 = x[:384]
    out2 = jax.block_until_ready(custom_mlp_nn_forward(x2, params, **kwargs))
    ref2 = _reference_forward(x2, params, **kwargs)
    assert out2.shape == (384, output_structure[1])
    assert jnp.allclose(out2, ref2, atol=2e-2, rtol=2e-2), "mismatch on ragged batch"

    print("KERNEL_OK")
</pallas_src>

<mosaic_0001>
module attributes {stable_mosaic.version = 11 : i64} {
  func.func @_mlp_kernel(%arg0: i32, %arg1: memref<256x64xf32, #tpu.memory_space<vmem>>, %arg2: memref<32x64xbf16, #tpu.memory_space<vmem>>, %arg3: memref<2x32x32xbf16, #tpu.memory_space<vmem>>, %arg4: memref<32x5xf32, #tpu.memory_space<vmem>>, %arg5: memref<1x256xf32, #tpu.memory_space<vmem>>) attributes {dimension_semantics = [#tpu.dimension_semantics<parallel>], iteration_bounds = array<i64: 2>, scalar_prefetch = 0 : i64, scratch_operands = 0 : i64, tpu.core_type = #tpu.core_type<tc>, window_params = [{transform_indices = @transform_0, window_bounds = array<i64: 256, 64>}, {pipeline_mode = #tpu.pipeline_mode<synchronous>, transform_indices = @transform_1, window_bounds = array<i64: 32, 64>}, {pipeline_mode = #tpu.pipeline_mode<synchronous>, transform_indices = @transform_2, window_bounds = array<i64: 2, 32, 32>}, {pipeline_mode = #tpu.pipeline_mode<synchronous>, transform_indices = @transform_3, window_bounds = array<i64: 32, 5>}, {transform_indices = @transform_4, window_bounds = array<i64: 1, 256>}]} {
    %c0 = arith.constant 0 : index
    %c0_0 = arith.constant 0 : index
    %0 = vector.load %arg1[%c0, %c0_0] : memref<256x64xf32, #tpu.memory_space<vmem>>, vector<256x64xf32>
    %1 = arith.truncf %0 : vector<256x64xf32> to vector<256x64xbf16>
    %c0_1 = arith.constant 0 : index
    %c0_2 = arith.constant 0 : index
    %2 = vector.load %arg2[%c0_1, %c0_2] : memref<32x64xbf16, #tpu.memory_space<vmem>>, vector<32x64xbf16>
    %cst = arith.constant dense<0.000000e+00> : vector<32x256xf32>
    %3 = tpu.matmul %2, %1, %cst {dimension_numbers = #tpu.dot_dimension_numbers<[1], [1], [0], [0], [0, 0, 1, 0], [], []>} : vector<32x64xbf16>, vector<256x64xbf16>, vector<32x256xf32> -> vector<32x256xf32>
    %c0_3 = arith.constant 0 : index
    %c0_4 = arith.constant 0 : index
    %4 = vector.load %arg4[%c0_3, %c0_4] : memref<32x5xf32, #tpu.memory_space<vmem>>, vector<32x1xf32>
    %5 = vector.broadcast %4 : vector<32x1xf32> to vector<32x256xf32>
    %6 = arith.addf %3, %5 : vector<32x256xf32>
    %7 = arith.truncf %6 : vector<32x256xf32> to vector<32x256xbf16>
    %cst_5 = arith.constant 0.000000e+00 : bf16
    %8 = vector.broadcast %cst_5 : bf16 to vector<32x256xbf16>
    %9 = arith.maximumf %7, %8 : vector<32x256xbf16>
    %c0_6 = arith.constant 0 : index
    %c0_7 = arith.constant 0 : index
    %c0_8 = arith.constant 0 : index
    %10 = vector.load %arg3[%c0_6, %c0_7, %c0_8] : memref<2x32x32xbf16, #tpu.memory_space<vmem>>, vector<1x32x32xbf16>
    %11 = vector.shape_cast %10 : vector<1x32x32xbf16> to vector<32x32xbf16>
    %cst_9 = arith.constant dense<0.000000e+00> : vector<32x256xf32>
    %12 = tpu.matmul %11, %9, %cst_9 {dimension_numbers = #tpu.dot_dimension_numbers<[1], [0], [0], [1], [0, 0, 1, 1], [], []>} : vector<32x32xbf16>, vector<32x256xbf16>, vector<32x256xf32> -> vector<32x256xf32>
    %c0_10 = arith.constant 0 : index
    %c1 = arith.constant 1 : index
    %13 = vector.load %arg4[%c0_10, %c1] : memref<32x5xf32, #tpu.memory_space<vmem>>, vector<32x1xf32>
    %14 = vector.broadcast %13 : vector<32x1xf32> to vector<32x256xf32>
    %15 = arith.addf %12, %14 : vector<32x256xf32>
    %16 = arith.truncf %15 : vector<32x256xf32> to vector<32x256xbf16>
    %cst_11 = arith.constant 0.000000e+00 : bf16
    %17 = vector.broadcast %cst_11 : bf16 to vector<32x256xbf16>
    %18 = arith.maximumf %16, %17 : vector<32x256xbf16>
    %c1_12 = arith.constant 1 : index
    %c0_13 = arith.constant 0 : index
    %c0_14 = arith.constant 0 : index
    %19 = vector.load %arg3[%c1_12, %c0_13, %c0_14] : memref<2x32x32xbf16, #tpu.memory_space<vmem>>, vector<1x32x32xbf16>
    %20 = vector.shape_cast %19 : vector<1x32x32xbf16> to vector<32x32xbf16>
    %cst_15 = arith.constant dense<0.000000e+00> : vector<32x256xf32>
    %21 = tpu.matmul %20, %18, %cst_15 {dimension_numbers = #tpu.dot_dimension_numbers<[1], [0], [0], [1], [0, 0, 1, 1], [], []>} : vector<32x32xbf16>, vector<32x256xbf16>, vector<32x256xf32> -> vector<32x256xf32>
    %c0_16 = arith.constant 0 : index
    %c2 = arith.constant 2 : index
    %22 = vector.load %arg4[%c0_16, %c2] : memref<32x5xf32, #tpu.memory_space<vmem>>, vector<32x1xf32>
    %23 = vector.broadcast %22 : vector<32x1xf32> to vector<32x256xf32>
    %24 = arith.addf %21, %23 : vector<32x256xf32>
    %25 = arith.truncf %24 : vector<32x256xf32> to vector<32x256xbf16>
    %cst_17 = arith.constant 0.000000e+00 : bf16
    %26 = vector.broadcast %cst_17 : bf16 to vector<32x256xbf16>
    %27 = arith.maximumf %25, %26 : vector<32x256xbf16>
    %c0_18 = arith.constant 0 : index
    %c3 = arith.constant 3 : index
    %28 = vector.load %arg4[%c0_18, %c3] : memref<32x5xf32, #tpu.memory_space<vmem>>, vector<32x1xf32>
    %c0_19 = arith.constant 0 : index
    %c4 = arith.constant 4 : index
    %29 = vector.load %arg4[%c0_19, %c4] : memref<32x5xf32, #tpu.memory_space<vmem>>, vector<1x1xf32>
    %30 = arith.extf %27 : vector<32x256xbf16> to vector<32x256xf32>
    %31 = vector.broadcast %28 : vector<32x1xf32> to vector<32x256xf32>
    %32 = arith.mulf %30, %31 : vector<32x256xf32>
    %cst_20 = arith.constant dense<0.000000e+00> : vector<256xf32>
    %33 = vector.multi_reduction <add>, %32, %cst_20 [0] : vector<32x256xf32> to vector<256xf32>
    %34 = vector.shape_cast %33 : vector<256xf32> to vector<1x256xf32>
    %35 = vector.broadcast %29 : vector<1x1xf32> to vector<1x256xf32>
    %36 = arith.addf %34, %35 : vector<1x256xf32>
    %37 = arith.negf %36 : vector<1x256xf32>
    %38 = math.exp %37 : vector<1x256xf32>
    %cst_21 = arith.constant 1.000000e+00 : f32
    %39 = vector.broadcast %cst_21 : f32 to vector<1x256xf32>
    %40 = arith.addf %39, %38 : vector<1x256xf32>
    %41 = arith.divf %39, %40 : vector<1x256xf32>
    %c0_22 = arith.constant 0 : index
    %c0_23 = arith.constant 0 : index
    %42 = vector.load %arg5[%c0_22, %c0_23] : memref<1x256xf32, #tpu.memory_space<vmem>>, vector<1x256xf32>
    tpu.vector_store %arg5[%c0_22, %c0_23], %41 {strides = array<i32>} : memref<1x256xf32, #tpu.memory_space<vmem>>, vector<1x256xf32>,
    return
  }
  func.func @transform_0(%arg0: i32) -> (i32, i32) {
    %c0_i32 = arith.constant 0 : i32
    %c0_i32_0 = arith.constant 0 : i32
    return %arg0, %c0_i32 : i32, i32
  }
  func.func @transform_1(%arg0: i32) -> (i32, i32) {
    %c0_i32 = arith.constant 0 : i32
    %c0_i32_0 = arith.constant 0 : i32
    %c0_i32_1 = arith.constant 0 : i32
    return %c0_i32, %c0_i32_0 : i32, i32
  }
  func.func @transform_2(%arg0: i32) -> (i32, i32, i32) {
    %c0_i32 = arith.constant 0 : i32
    %c0_i32_0 = arith.constant 0 : i32
    %c0_i32_1 = arith.constant 0 : i32
    %c0_i32_2 = arith.constant 0 : i32
    return %c0_i32, %c0_i32_0, %c0_i32_1 : i32, i32, i32
  }
  func.func @transform_3(%arg0: i32) -> (i32, i32) {
    %c0_i32 = arith.constant 0 : i32
    %c0_i32_0 = arith.constant 0 : i32
    %c0_i32_1 = arith.constant 0 : i32
    return %c0_i32, %c0_i32_0 : i32, i32
  }
  func.func @transform_4(%arg0: i32) -> (i32, i32) {
    %c0_i32 = arith.constant 0 : i32
    %c0_i32_0 = arith.constant 0 : i32
    return %c0_i32, %arg0 : i32, i32
  }
}

</mosaic_0001>

<bundles_post_ra>
// kernel: tpu_custom_call.1
= control target key start
LH: loop header
LB: loop body
LE: loop exit
PB: predicated region body
PF: predicated region fallthrough
CT: control target
= control target key end

     0   :  { %9 = vsyncpa [#allocation3], 0  ;;  %s1210_s0 = inlined_call_operand.vmem [shape: f32[512,64], index: 0, kind: input, shape index: {}]   ;;  %s1211_s1 = inlined_call_operand.vmem [shape: bf16[32,64], index: 1, kind: input, shape index: {}]   ;;  %s1212_s2 = inlined_call_operand.vmem [shape: bf16[2,32,32], index: 2, kind: input, shape index: {}]   ;;  %s1213_s3 = inlined_call_operand.vmem [shape: f32[32,5], index: 3, kind: input, shape index: {}]   ;;  %s1214_s4 = inlined_call_operand.hbm [shape: f32[1,512], index: 4, kind: output, shape index: {}]  }
   0x1   :  { %11 = vsyncpa [#allocation3 + $0x1], 0  ;;  %s987_s15 = smov 0   ;;  %s989_s16 = smov 0  }
   0x2   :  { %s991_s17 = smov 0   ;;  %s993_s18 = smov 0  }
   0x3 LB: > { %s764_s19 = sadd.s32 4294967295, %s953_s18   ;;  %s765_s20 = sadd.s32 4294967294, %s953_s18   ;;  %s953_s18 = sphi %s993_s18, %s1220_s18   ;;  %s949_s17 = sphi %s991_s17, %s1219_s17   ;;  %s945_s16 = sphi %s989_s16, %s1218_s16   ;;  %s941_s15 = sphi %s987_s15, %s1217_s15  }
   0x4   : > { %s1010_s21 = sadd.s32 1, %s953_s18   ;;  %s113_s22 = sadd.s32 1, %s949_s17 }
   0x5   : > { %s110_s23 = ssub.s32 %s953_s18, %s1010_s21  ;;  %p123_p0 = scmp.ne.s32.totalorder %s949_s17, %s945_s16 }
   0x6   : > { %p111_p1 = scmp.eq.s32.totalorder %s110_s23, 0  ;;  %p124_p2 = scmp.eq.s32.totalorder %s764_s19, 1 }
   0x7   : > { %p129_p3 = scmp.ne.s32.totalorder %s945_s16, %s941_s15  ;;  %p130_p4 = scmp.eq.s32.totalorder %s765_s20, 1 }
   0x8   : > { %s1020_s24 = scalar_select %p111_p1, %s949_s17, %s113_s22  }
   0x9   : > { %p1022_p5 = por %p124_p2, %p123_p0  ;;  %p1026_p6 = por %p130_p4, %p129_p3 }
   0xa   : > { %p768_p7 = scmp.ge.s32.totalorder %s953_s18, 1  ;;  %p166_p8 = scmp.lt.s32.totalorder %s953_s18, 3 }
   0xc   : > { %p167_p9 = pnand %p768_p7, %p166_p8 }
   0xd   : > { %s1032_s27 = sshll.u32 (!%p167_p9), %s764_s19, 5  ;;  %s189_s12 = sand.u32 (!%p167_p9), 1, %s945_s16  }
   0xe   : > { %170 = sbr.rel (%p167_p9) target bundleno = 819 (0x333), region = 36  ;;  %p193_p10 = scmp.lt.s32.totalorder (!%p167_p9), %s1032_s27, 63 }
   0xf   : > { %s769_s13 = sshll.u32 (!%p167_p9), %s189_s12, 1  ;;  %s704_s23 = scalar_lea.hbm (!%p167_p9), %s1214_s4, %s1032_s27 }
  0x10   : > { %s692_s28 = scalar_lea.sflag (!%p167_p9), [#allocation3], %s189_s12  ;;  %s961_s30 = smov (!%p167_p9), [#allocation2]  }
  0x11   : > { %s897_s5 = sshll.u32 (!%p167_p9), %s961_s30, 4  ;;  %s898_s5 = int_to_ptr.vmem [resolvable:$false] %s897_s5 }
  0x13   : > { %v1038_v0 = vld [vmem:[%s1211_s1] sm:$0xff]   ;;  %vm286_vm0 = vcmask 523264   ;;  %s194_s6 = scalar_select %p193_p10, %s1032_s27, 63  ;;  %v955_v2 = vmov 0   ;;  %v1052_v3 = vld [vmem:[%s1213_s3 + $0x10] sm:$0xff]  ;;  %v1059_v4 = vld [vmem:[%s1213_s3 + $0x8] sm:$0xff] }
  0x14   : > { %v1043_v1 = vld [vmem:[%s1213_s3] sm:$0xff]  ;;  %812 = vmatprep.mubr.msk.bf16.mxu0 %vm286_vm0, %v1038_v0  ;;  %870 = vset.pattern.permute.xlu1 %v955_v2  ;;  %v1071_v5 = vld [vmem:[%s1213_s3 + $0x18] sm:$0xff]  ;;  %v880_v62 = vld [vmem:[%s1211_s1 + $0x8] sm:$0xff]   ;;  %v956_v63 = vmov 1   ;;  %vm432_vm1 = vcmask 261120  }
  0x15   : > { %258 = vperm.xlu1 %870, %v1043_v1   ;;  %869 = vset.pattern.permute.xlu0 %v955_v2  ;;  %s771_s9 = sshll.u32 %s194_s6, 3  ;;  %s899_s6 = scalar_lea.vmem %s898_s5, 64 }
  0x16   : > { %268 = vperm.xlu0 %869, %v1052_v3   ;;  %471 = vmatprep.mubr.bf16.mxu1 %v955_v2  ;;  %s1066_s14 = scalar_lea.vmem %s1210_s0, %s771_s9 }
  0x17   : > { %v230_v6 = vld [vmem:[%s1066_s14 + $0xf0] sm:$0xff]  ;;  %v231_v7 = vld [vmem:[%s1066_s14 + $0xf8] sm:$0xff]  ;;  %v228_v11 = vld [vmem:[%s1066_s14 + $0xe0] sm:$0xff] }
  0x18   : > { %v214_v8 = vld [vmem:[%s1066_s14 + $0x70] sm:$0xff]  ;;  %v247_v9 = vpack.c.bf16 %v231_v7, %v230_v6  ;;  %v215_v10 = vld [vmem:[%s1066_s14 + $0x78] sm:$0xff]  ;;  %v229_v12 = vld [vmem:[%s1066_s14 + $0xe8] sm:$0xff] }
  0x19   : > { %263 = vperm.xlu1 %870, %v1059_v4   ;;  %v239_v13 = vpack.c.bf16 %v215_v10, %v214_v8  ;;  %v246_v14 = vpack.c.bf16 %v229_v12, %v228_v11  ;;  %v212_v15 = vld [vmem:[%s1066_s14 + $0x60] sm:$0xff]  ;;  %v213_v16 = vld [vmem:[%s1066_s14 + $0x68] sm:$0xff]  ;;  %v226_v19 = vld [vmem:[%s1066_s14 + $0xd0] sm:$0xff] }
  0x1a   : > { %273 = vperm.xlu0 %869, %v1071_v5   ;;  %816 = vmatprep.subr.msk.bf16.mxu0 %vm286_vm0, %v247_v9  ;;  %v238_v18 = vpack.c.bf16 %v213_v16, %v212_v15  ;;  %v227_v20 = vld [vmem:[%s1066_s14 + $0xd8] sm:$0xff]  ;;  %v210_v23 = vld [vmem:[%s1066_s14 + $0x50] sm:$0xff]  ;;  %v224_v26 = vld [vmem:[%s1066_s14 + $0xc0] sm:$0xff] }
  0x1b   : > { %v315_v17 = vsel %vm286_vm0, %v239_v13, 0  ;;  %v245_v22 = vpack.c.bf16 %v227_v20, %v226_v19  ;;  %v211_v24 = vld [vmem:[%s1066_s14 + $0x58] sm:$0xff]  ;;  %v225_v27 = vld [vmem:[%s1066_s14 + $0xc8] sm:$0xff]  ;;  %v208_v30 = vld [vmem:[%s1066_s14 + $0x40] sm:$0xff] }
  0x1c   : > { %797 = vmatpush3.bf16.xpose.msra.mxu0 %v315_v17  ;;  %v312_v21 = vsel %vm286_vm0, %v238_v18, 0  ;;  %v237_v25 = vpack.c.bf16 %v211_v24, %v210_v23  ;;  %v244_v29 = vpack.c.bf16 %v225_v27, %v224_v26  ;;  %v209_v31 = vld [vmem:[%s1066_s14 + $0x48] sm:$0xff]  ;;  %v222_v33 = vld [vmem:[%s1066_s14 + $0xb0] sm:$0xff]  ;;  %v223_v34 = vld [vmem:[%s1066_s14 + $0xb8] sm:$0xff] }
  0x1d   : > { %817 = vmatprep.subr.msk.bf16.mxu0 %vm286_vm0, %v246_v14  ;;  %v236_v32 = vpack.c.bf16 %v209_v31, %v208_v30  ;;  %v243_v36 = vpack.c.bf16 %v223_v34, %v222_v33  ;;  %v206_v37 = vld [vmem:[%s1066_s14 + $0x30] sm:$0xff]  ;;  %v207_v38 = vld [vmem:[%s1066_s14 + $0x38] sm:$0xff]  ;;  %v220_v40 = vld [vmem:[%s1066_s14 + $0xa0] sm:$0xff]  ;;  %872 = vset.pattern.permute.xlu1 %v956_v63 }
  0x1e   : > { %v309_v28 = vsel %vm286_vm0, %v237_v25, 0  ;;  %v235_v39 = vpack.c.bf16 %v207_v38, %v206_v37  ;;  %v221_v41 = vld [vmem:[%s1066_s14 + $0xa8] sm:$0xff]  ;;  %v204_v44 = vld [vmem:[%s1066_s14 + $0x20] sm:$0xff]  ;;  %v218_v47 = vld [vmem:[%s1066_s14 + $0x90] sm:$0xff]  ;;  %871 = vset.pattern.permute.xlu0 %v956_v63  ;;  %419 = vperm.xlu1 %872, %v1071_v5   ;;  %v959_v37 = vmov 4  }
  0x1f   : > { %v306_v35 = vsel %vm286_vm0, %v236_v32, 0  ;;  %v242_v43 = vpack.c.bf16 %v221_v41, %v220_v40  ;;  %v205_v45 = vld [vmem:[%s1066_s14 + $0x28] sm:$0xff]  ;;  %v219_v48 = vld [vmem:[%s1066_s14 + $0x98] sm:$0xff]  ;;  %v202_v51 = vld [vmem:[%s1066_s14 + $0x10] sm:$0xff]  ;;  %415 = vperm.xlu0 %871, %v1052_v3  }
  0x20   : > { %v303_v42 = vsel %vm286_vm0, %v235_v39, 0  ;;  %v234_v46 = vpack.c.bf16 %v205_v45, %v204_v44  ;;  %v241_v50 = vpack.c.bf16 %v219_v48, %v218_v47  ;;  %v203_v52 = vld [vmem:[%s1066_s14 + $0x18] sm:$0xff]  ;;  %v216_v54 = vld [vmem:[%s1066_s14 + $0x80] sm:$0xff]  ;;  %v217_v55 = vld [vmem:[%s1066_s14 + $0x88] sm:$0xff] }
  0x21   : > { %v233_v53 = vpack.c.bf16 %v203_v52, %v202_v51  ;;  %v240_v57 = vpack.c.bf16 %v217_v55, %v216_v54  ;;  %v200_v58 = vld [vmem:[%s1066_s14] sm:$0xff]  ;;  %v201_v59 = vld [vmem:[%s1066_s14 + $0x8] sm:$0xff]  ;;  %v883_v63 = vld [vmem:[%s1212_s2 + $0x10] sm:$0xff]   ;;  %s191_s14 = scalar_lea.vmem [#allocation2], %s769_s13 }
  0x22   : > { %v300_v49 = vsel %vm286_vm0, %v234_v46, 0  ;;  %v232_v60 = vpack.c.bf16 %v201_v59, %v200_v58  ;;  %407 = vperm.xlu1 %872, %v1043_v1   ;;  %v881_v33 = vld [vmem:[%s1212_s2] sm:$0xff]   ;;  %v882_v34 = vld [vmem:[%s1212_s2 + $0x8] sm:$0xff]   ;;  %s706_s19 = sshll.u32 %s191_s14, 4  ;;  %s707_s19 = int_to_ptr.vmem [resolvable:$true] %s706_s19 }
  0x23   : > { %v297_v56 = vsel %vm286_vm0, %v233_v53, 0  ;;  %411 = vperm.xlu0 %871, %v1059_v4   ;;  %v598_v38 = vld [vmem:[%s1213_s3] sm:$0x1]  ;;  %s893_s29 = scalar_lea.vmem %s707_s19, 32  ;;  %p900_p0 = scmp.lt.s32.totalorder %s707_s19, %s898_s5 }
  0x24   : > { %799 = vmatpush3.bf16.xpose.msra.mxu0 %v312_v21  ;;  %v294_v61 = vsel %vm286_vm0, %v232_v60, 0  ;;  %p894_p11 = scmp.ne.s32.totalorder %s707_s19, %s893_s29  ;;  %p901_p1 = scmp.lt.s32.totalorder %s899_s6, %s893_s29 }
  0x25   : > { %818 = vmatprep.subr.msk.bf16.mxu0 %vm286_vm0, %v245_v22 }
  0x26   : > { %p895_p12 = pnand %p894_p11, %p1022_p5  ;;  %p902_p2 = por %p901_p1, %p900_p0 }
  0x28   : > { %p896_p13 = pneg %p895_p12 }
  0x2a   : > { %p903_p3 = pnand %p902_p2, %p896_p13 }
  0x2c   : > { %801 = vmatpush3.bf16.xpose.msra.mxu0 %v309_v28 }
  0x2d   : > { %819 = vmatprep.subr.msk.bf16.mxu0 %vm286_vm0, %v244_v29 }
  0x34   : > { %803 = vmatpush3.bf16.xpose.msra.mxu0 %v306_v35  ;;  %v957_v35 = vmov 2  }
  0x35   : > { %820 = vmatprep.subr.msk.bf16.mxu0 %vm286_vm0, %v243_v36  ;;  %873 = vset.pattern.permute.xlu1 %v957_v35  ;;  %v958_v36 = vmov 3  }
  0x36   : > { %874 = vset.pattern.permute.xlu0 %v957_v35  ;;  %506 = vperm.xlu1 %873, %v1043_v1  }
  0x37   : > { %510 = vperm.xlu0 %874, %v1059_v4  }
  0x3a   : > { %514 = vperm.xlu1 %873, %v1052_v3  }
  0x3b   : > { %875 = vset.pattern.permute.xlu0 %v958_v36 }
  0x3c   : > { %805 = vmatpush3.bf16.xpose.msra.mxu0 %v303_v42  ;;  %608 = vperm.xlu0 %875, %v1043_v1  }
  0x3d   : > { %821 = vmatprep.subr.msk.bf16.mxu0 %vm286_vm0, %v242_v43 }
  0x3e   : > { %518 = vperm.xlu1 %873, %v1071_v5  }
  0x40   : > { %620 = vperm.xlu0 %875, %v1071_v5  }
  0x42   : > { %876 = vset.pattern.permute.xlu1 %v958_v36 }
  0x43   : > { %612 = vperm.xlu1 %876, %v1059_v4  }
  0x44   : > { %807 = vmatpush3.bf16.xpose.msra.mxu0 %v300_v49  ;;  %878 = vset.pattern.permute.xlu0 %v959_v37 }
  0x45   : > { %822 = vmatprep.subr.msk.bf16.mxu0 %vm286_vm0, %v241_v50 }
  0x47   : > { %616 = vperm.xlu1 %876, %v1052_v3  }
  0x4b   : > { %877 = vset.pattern.permute.xlu1 %v959_v37 }
  0x4c   : > { %809 = vmatpush3.bf16.xpose.msra.mxu0 %v297_v56  ;;  %651 = vperm.xlu1 %877, %v598_v38  }
  0x4d   : > { %823 = vmatprep.subr.msk.bf16.mxu0 %vm286_vm0, %v240_v57 }
  0x54   : > { %811 = vmatpush3.bf16.xpose.msra.mxu0 %v294_v61 }
  0x5b   : > { %813 = vmatmul.mubr.msk.bf16.vlgmr.msra.gmra.mxu0 %vm286_vm0, %v1038_v0 }
  0x5c   : > { %814 = vmatprep.mubr.msk.bf16.mxu0 %vm286_vm0, %v880_v62 }
  0x63   : > { %815 = vmatmul.mubr.msk.bf16.gmra.mxu0 %vm286_vm0, %v880_v62 }
  0x90   : > { %v259_v9 = vpop.permute.xlu1 %258 }
  0x91   : > { %v269_v0 = vpop.permute.xlu0 %268 }
  0x94   : > { %v264_v13 = vpop.permute.xlu1 %263 }
  0x95   : > { %v274_v14 = vpop.permute.xlu0 %273 }
  0x99   : > { %v420_v43 = vpop.permute.xlu1 %419 }
  0x9a   : > { %v416_v41 = vpop.permute.xlu0 %415 }
  0x9d   : > { %v408_v48 = vpop.permute.xlu1 %407 }
  0x9e   : > { %v412_v45 = vpop.permute.xlu0 %411 }
 0x11b   : > { %v375_v6 = vpop.f32.mrf.mxu0 }
 0x11c   : > { %v376_v27 = vadd.f32 %v375_v6, %v259_v9  ;;  %v884_v6 = vld [vmem:[%s1212_s2 + $0x18] sm:$0xff]  }
 0x11d   : > { %v377_v7 = vpop.f32.mrf.mxu0 }
 0x11e   : > { %v378_v20 = vadd.f32 %v377_v7, %v259_v9  ;;  %v507_v7 = vpop.permute.xlu1 %506 }
 0x11f   : > { %v379_v8 = vpop.f32.mrf.mxu0 }
 0x120   : > { %v380_v23 = vadd.f32 %v379_v8, %v264_v13 }
 0x121   : > { %v381_v10 = vpop.f32.mrf.mxu0 }
 0x122   : > { %v382_v16 = vadd.f32 %v381_v10, %v264_v13  ;;  %v394_v29 = vpack.c.bf16 %v380_v23, %v376_v27  ;;  %v515_v10 = vpop.permute.xlu1 %514 }
 0x123   : > { %v385_v11 = vpop.f32.mrf.mxu0 }
 0x124   : > { %v386_v18 = vadd.f32 %v385_v11, %v269_v0  ;;  %v395_v25 = vpack.c.bf16 %v382_v16, %v378_v20  ;;  %v398_v32 = vmax.bf16 %v955_v2, %v394_v29 }
 0x125   : > { %v387_v12 = vpop.f32.mrf.mxu0 }
 0x126   : > { %v388_v21 = vadd.f32 %v387_v12, %v269_v0  ;;  %v399_v31 = vmax.bf16 %v955_v2, %v395_v25  ;;  %v511_v0 = vpop.permute.xlu0 %510  ;;  %v519_v20 = vpop.permute.xlu1 %518 }
 0x127   : > { %v389_v15 = vpop.f32.mrf.mxu0 }
 0x128   : > { %v390_v17 = vadd.f32 %v389_v15, %v274_v14 }
 0x129   : > { %v391_v19 = vpop.f32.mrf.mxu0 }
 0x12a   : > { %v392_v22 = vadd.f32 %v391_v19, %v274_v14  ;;  %v396_v24 = vpack.c.bf16 %v390_v17, %v386_v18  ;;  %v613_v27 = vpop.permute.xlu1 %612 }
 0x12c   : > { %v397_v26 = vpack.c.bf16 %v392_v22, %v388_v21  ;;  %v400_v30 = vmax.bf16 %v955_v2, %v396_v24 }
 0x12e   : > { %v401_v28 = vmax.bf16 %v955_v2, %v397_v26 }
 0x130   : > { %451 = vmatprep.subr.bf16.mxu1 %v401_v28 }
 0x131   : > { %452 = vmatpush1.bf16.msra.mxu1 %v400_v30 }
 0x132   : > { %453 = vmatprep.subr.bf16.mxu1 %v399_v31 }
 0x135   : > { %454 = vmatpush1.bf16.msra.mxu1 %v398_v32  ;;  %v609_v32 = vpop.permute.xlu0 %608 }
 0x138   : > { %778 = vmatmul.mubr.msk.bf16.vlgmr.msra.gmra.mxu1 %vm432_vm1, %v881_v33 }
 0x139   : > { %481 = vmatprep.mubr.bf16.mxu1 %v955_v2 }
 0x140   : > { %779 = vmatmul.mubr.msk.bf16.gmra.mxu1 %vm432_vm1, %v882_v34 }
 0x141   : > { %569 = vmatprep.mubr.bf16.mxu1 %v955_v2 }
 0x1f8   : > { %v473_v39 = vpop.f32.mrf.mxu1 }
 0x1f9   : > { %v474_v57 = vadd.f32 %v473_v39, %v408_v48 }
 0x1fa   : > { %v475_v40 = vpop.f32.mrf.mxu1 }
 0x1fb   : > { %v476_v50 = vadd.f32 %v475_v40, %v408_v48 }
 0x1fc   : > { %v477_v1 = vpop.f32.mrf.mxu1 }
 0x1fd   : > { %v478_v53 = vadd.f32 %v477_v1, %v412_v45 }
 0x1fe   : > { %v479_v42 = vpop.f32.mrf.mxu1 }
 0x1ff   : > { %v480_v46 = vadd.f32 %v479_v42, %v412_v45  ;;  %v492_v59 = vpack.c.bf16 %v478_v53, %v474_v57  ;;  %v621_v45 = vpop.permute.xlu0 %620 }
 0x200   : > { %v483_v5 = vpop.f32.mrf.mxu1 }
 0x201   : > { %v484_v3 = vadd.f32 %v483_v5, %v416_v41  ;;  %v493_v55 = vpack.c.bf16 %v480_v46, %v476_v50  ;;  %v496_v62 = vmax.bf16 %v955_v2, %v492_v59 }
 0x202   : > { %v485_v44 = vpop.f32.mrf.mxu1 }
 0x203   : > { %v486_v51 = vadd.f32 %v485_v44, %v416_v41  ;;  %v497_v61 = vmax.bf16 %v955_v2, %v493_v55  ;;  %v617_v44 = vpop.permute.xlu1 %616 }
 0x204   : > { %v487_v4 = vpop.f32.mrf.mxu1 }
 0x205   : > { %v488_v47 = vadd.f32 %v487_v4, %v420_v43 }
 0x206   : > { %v489_v49 = vpop.f32.mrf.mxu1 }
 0x207   : > { %v490_v52 = vadd.f32 %v489_v49, %v420_v43  ;;  %v494_v54 = vpack.c.bf16 %v488_v47, %v484_v3 }
 0x209   : > { %v495_v56 = vpack.c.bf16 %v490_v52, %v486_v51  ;;  %v498_v60 = vmax.bf16 %v955_v2, %v494_v54 }
 0x20b   : > { %v499_v58 = vmax.bf16 %v955_v2, %v495_v56 }
 0x20d   : > { %549 = vmatprep.subr.bf16.mxu1 %v499_v58 }
 0x20e   : > { %550 = vmatpush1.bf16.msra.mxu1 %v498_v60 }
 0x20f   : > { %551 = vmatprep.subr.bf16.mxu1 %v497_v61 }
 0x212   : > { %552 = vmatpush1.bf16.msra.mxu1 %v496_v62 }
 0x215   : > { %786 = vmatmul.mubr.msk.bf16.vlgmr.msra.gmra.mxu1 %vm432_vm1, %v883_v63 }
 0x216   : > { %579 = vmatprep.mubr.bf16.mxu1 %v955_v2 }
 0x21d   : > { %787 = vmatmul.mubr.msk.bf16.gmra.mxu1 %vm432_vm1, %v884_v6  ;;  %v652_v6 = vpop.permute.xlu1 %651 }
 0x2d5   : > { %v571_v8 = vpop.f32.mrf.mxu1 }
 0x2d6   : > { %v572_v12 = vadd.f32 %v571_v8, %v507_v7 }
 0x2d7   : > { %v573_v9 = vpop.f32.mrf.mxu1 }
 0x2d8   : > { %v574_v15 = vadd.f32 %v573_v9, %v507_v7 }
 0x2d9   : > { %v575_v11 = vpop.f32.mrf.mxu1 }
 0x2da   : > { %v576_v13 = vadd.f32 %v575_v11, %v511_v0 }
 0x2db   : > { %v577_v14 = vpop.f32.mrf.mxu1 }
 0x2dc   : > { %v578_v16 = vadd.f32 %v577_v14, %v511_v0  ;;  %v590_v17 = vpack.c.bf16 %v576_v13, %v572_v12 }
 0x2dd   : > { %v581_v18 = vpop.f32.mrf.mxu1 }
 0x2de   : > { %v591_v19 = vpack.c.bf16 %v578_v16, %v574_v15  ;;  %v594_v21 = vmax.bf16 %v955_v2, %v590_v17  ;;  %v582_v25 = vadd.f32 %v581_v18, %v515_v10  ;;  %v960_v17 = vmov 1966171168  }
 0x2df   : > { %v583_v22 = vpop.f32.mrf.mxu1  ;;  %v672_v18 = vunpack.c.l.s4 %v960_v17 }
 0x2e0   : > { %v595_v23 = vmax.bf16 %v955_v2, %v591_v19  ;;  %v601_v28 = vunpack.c.h.bf16 %v594_v21  ;;  %v599_v29 = vunpack.c.l.bf16 %v594_v21  ;;  %v584_v33 = vadd.f32 %v583_v22, %v515_v10 }
 0x2e1   : > { %v585_v24 = vpop.f32.mrf.mxu1  ;;  %v674_v19 = vlaneseq }
 0x2e2   : > { %v586_v26 = vadd.f32 %v585_v24, %v519_v20  ;;  %v602_v31 = vunpack.c.h.bf16 %v595_v23  ;;  %v600_v36 = vunpack.c.l.bf16 %v595_v23  ;;  %v625_v39 = vmul.f32 %v613_v27, %v601_v28 }
 0x2e3   : > { %v587_v30 = vpop.f32.mrf.mxu1  ;;  %v623_v40 = vmul.f32 %v609_v32, %v599_v29  ;;  %v675_v21 = vshrl.u32 %v674_v19, 7  ;;  %vm688_vm2 = vcmp.lt.s32.totalorder %v674_v19, 256 }
 0x2e4   : > { %v592_v34 = vpack.c.bf16 %v586_v26, %v582_v25  ;;  %v588_v35 = vadd.f32 %v587_v30, %v519_v20  ;;  %v626_v1 = vmul.f32 %v613_v27, %v602_v31  ;;  %v624_v42 = vmul.f32 %v609_v32, %v600_v36 }
 0x2e5   : > { %v631_v4 = vadd.f32 %v625_v39, %v623_v40  ;;  %v673_v20 = vunpack.c.0.s8 %v672_v18 }
 0x2e6   : > { %v596_v37 = vmax.bf16 %v955_v2, %v592_v34  ;;  %v593_v38 = vpack.c.bf16 %v588_v35, %v584_v33  ;;  %v640_v3 = vadd.f32 %v626_v1, %v624_v42 }
 0x2e7   : > { %v676_v23 = vsub.s32 %v673_v20, %v675_v21 }
 0x2e8   : > { %v597_v41 = vmax.bf16 %v955_v2, %v593_v38  ;;  %v603_v43 = vunpack.c.l.bf16 %v596_v37  ;;  %v605_v5 = vunpack.c.h.bf16 %v596_v37 }
 0x2ea   : > { %v604_v46 = vunpack.c.l.bf16 %v597_v41  ;;  %v627_v47 = vmul.f32 %v617_v44, %v603_v43  ;;  %v606_v48 = vunpack.c.h.bf16 %v597_v41  ;;  %v629_v51 = vmul.f32 %v621_v45, %v605_v5 }
 0x2ec   : > { %v628_v49 = vmul.f32 %v617_v44, %v604_v46  ;;  %v632_v50 = vadd.f32 %v631_v4, %v627_v47  ;;  %v630_v53 = vmul.f32 %v621_v45, %v606_v48 }
 0x2ee   : > { %v641_v52 = vadd.f32 %v640_v3, %v628_v49  ;;  %v633_v54 = vadd.f32 %v632_v50, %v629_v51 }
 0x2f0   : > { %v634_v55 = vrot.slane %v633_v54, 4  ;;  %v642_v56 = vadd.f32 %v641_v52, %v630_v53 }
 0x2f2   : > { %v635_v57 = vadd.f32 %v634_v55, %v633_v54  ;;  %v643_v2 = vrot.slane %v642_v56, 4 }
 0x2f4   : > { %v644_v58 = vadd.f32 %v643_v2, %v642_v56  ;;  %v636_v59 = vrot.slane %v635_v57, 2 }
 0x2f6   : > { %v637_v60 = vadd.f32 %v636_v59, %v635_v57  ;;  %v645_v61 = vrot.slane %v644_v58, 2 }
 0x2f8   : > { %v638_v62 = vrot.slane %v637_v60, 1  ;;  %v646_v63 = vadd.f32 %v645_v61, %v644_v58 }
 0x2fa   : > { %v639_v7 = vadd.f32 %v638_v62, %v637_v60  ;;  %v647_v8 = vrot.slane %v646_v63, 1 }
 0x2fc   : > { %v648_v9 = vadd.f32 %v647_v8, %v646_v63  ;;  %v654_v0 = vadd.f32 %v652_v6, %v639_v7 }
 0x2fe   : > { %v655_v10 = vadd.f32 %v652_v6, %v648_v9  ;;  %v788_v11 = vmul.f32 -1.442695, %v654_v0 }
 0x300   : > { %885 = vpow2.f32 %v788_v11  ;;  %v789_v12 = vmul.f32 -1.442695, %v655_v10 }
 0x302   : > { %887 = vpow2.f32 %v789_v12 }
 0x30d   : > { %v886_v13 = vpop.eup %885 }
 0x30e   : > { %v662_v14 = vadd.f32 1.0, %v886_v13 }
 0x30f   : > { %v888_v15 = vpop.eup %887 }
 0x310   : > { %v663_v16 = vadd.f32 1.0, %v888_v15  ;;  %889 = vrcp.f32 %v662_v14 }
 0x312   : > { %891 = vrcp.f32 %v663_v16 }
 0x31d   : > { %v890_v22 = vpop.eup %889 }
 0x31f   : > { %v892_v24 = vpop.eup %891 }
 0x320   : > { %v670_v25 = vcombine.low %v890_v22, %v892_v24 }
 0x322   : > { %v677_v26 = vrot.slane %v670_v25, %v676_v23 }
 0x324   : > { %v684_v27 = vrot.slane %v677_v26, %v676_v23 }
 0x326   : > { %690 = vst.msk [vmem:[%s191_s14] sm:$0x3] %vm688_vm2, %v684_v27 }
 0x327   : > { %906 = shalt.err (!%p903_p3)
}
 0x328   : > { %s907_s7 = scalar_lea.hbm %s704_s23, 32  ;;  %s911_s9 = scalar_lea.hbm %s1214_s4, 64 }
 0x329   : > { %p908_p4 = scmp.ne.s32.totalorder %s704_s23, %s907_s7  ;;  %p912_p9 = scmp.lt.s32.totalorder %s704_s23, %s1214_s4 }
 0x32a   : > { %p913_p10 = scmp.lt.s32.totalorder %s911_s9, %s907_s7 }
 0x32b   : > { %p909_p7 = pnand %p908_p4, %p1022_p5 }
 0x32c   : > { %p914_p11 = por %p913_p10, %p912_p9 }
 0x32d   : > { %p910_p8 = pneg %p909_p7 }
 0x32f   : > { %p915_p12 = pnand %p914_p11, %p910_p8 }
 0x331   : > { %918 = shalt.err (!%p915_p12)
}
 0x332   : > { %824 = dma.vmem_to_hbm [thread:$0]  (%p1022_p5), %s707_s19, 32, %s704_s23, %s692_s28  }
 0x333 PF: > { %p830_p13 = scmp.ge.s32.totalorder %s953_s18, 2  ;;  %s718_s12 = sand.u32 1, %s941_s15  }
 0x334   : > { %s719_s13 = scalar_lea.sflag [#allocation3], %s718_s12 }
 0x335   : > { %p827_p0 = pnand %p830_p13, %p1026_p6 }
 0x337   : > { %p828_p1 = pneg %p827_p0 }
 0x339   : > { %936 = dma.done.wait (%p828_p1), %s719_s13, 32  }
 0x33a   : > { %938 = vsyncadd (%p828_p1), %s719_s13, 4294967264  ;;  %p14_p2 = scmp.ge.s32.totalorder %s1010_s21, 4   ;;  %s1217_s15 = smov %s945_s16 }
 0x33b   : > { %s1218_s16 = smov %s949_s17  ;;  %s1219_s17 = smov %s1020_s24 }
 0x33c   : > { %s1220_s18 = smov %s1010_s21  ;;  %16 = sbr.rel (!%p14_p2) target bundleno = 3 (0x3), region = 72 }
 0x341   :  { %724 = vsyncpa [#allocation3], 1 }
 0x342   :  { %726 = vsyncpa [#allocation3 + $0x1], 1 }

</bundles_post_ra>
